<compile_context>
chip_gen: v7x
topology: tpu7x:2x2x1
jax: 0.10.0
libtpu: 0.0.40
codegen_flags: <defaults>
</compile_context>

<pallas_src>
import functools

import jax
import jax.numpy as jnp
from jax import lax
from jax.experimental import pallas as pl
from jax.experimental.pallas import tpu as pltpu

NB_ACTIONS = 12     # env.nb_actions == config['nb_directions'] (discrete actions)
OBS_DIM = 7
H1 = 512
H2 = 256
HEAD_W = 128        # lane-padded fused head width (adv+val: lanes 0..11, adv-rowsum: lane 12)


def _round_up(x, m):
    return ((x + m - 1) // m) * m


def _qnet_kernel(obs_ref, w1_ref, b1_ref, wb_ref, bb_ref, wh_ref, bh_ref,
                 out_ref, advsum_ref, *, batch, tile_b):
    i = pl.program_id(0)
    n = pl.num_programs(0)

    @pl.when(i == 0)
    def _init():
        advsum_ref[...] = jnp.zeros_like(advsum_ref)

    x = obs_ref[...].astype(jnp.bfloat16)                          # (TB, 7)

    # Shared trunk: Linear(7, 512) + ReLU   (bf16 MXU inputs, f32 accumulate)
    h = jnp.dot(x, w1_ref[...],
                preferred_element_type=jnp.float32) + b1_ref[...]
    h = jnp.maximum(h, 0.0)                                        # (TB, 512) f32

    # Fused adv|val hidden: Linear(512, 512) + ReLU  (W = [Wa1 | Wv1])
    y = jnp.dot(h.astype(jnp.bfloat16), wb_ref[...],
                preferred_element_type=jnp.float32) + bb_ref[...]
    y = jnp.maximum(y, 0.0)                                        # (TB, 512) f32

    # Fused heads: Linear(512, 128).
    #   lanes 0..11 = adv + val  (val broadcast baked into the weights)
    #   lane  12    = per-row sum of adv over the 12 actions (for the global mean)
    #   lanes 13..  = 0
    heads = jnp.dot(y.astype(jnp.bfloat16), wh_ref[...],
                    preferred_element_type=jnp.float32) + bh_ref[...]

    # Global adv sum: lane 12 of the real batch rows only (padding rows excluded)
    # -> exact torch `adv.mean()` semantics under tiling.
    lane = lax.broadcasted_iota(jnp.int32, heads.shape, 1)
    row = lax.broadcasted_iota(jnp.int32, heads.shape, 0) + i * tile_b
    adv_col = jnp.where((lane == NB_ACTIONS) & (row < batch), heads, 0.0)
    tile_sum = jnp.sum(jnp.sum(adv_col, axis=1, keepdims=True),
                       axis=0, keepdims=True)                      # (1, 1)
    advsum_ref[...] += tile_sum

    # Lane-dense store of this tile into the VMEM-resident output slab.
    r0 = pl.multiple_of(i * tile_b, 8)
    out_ref[pl.ds(r0, tile_b), :] = heads

    @pl.when(i == n - 1)
    def _finalize():
        adv_mean = advsum_ref[...] * (1.0 / (batch * NB_ACTIONS))  # (1, 1)
        out_ref[...] = out_ref[...] - adv_mean


def _fuse_params(p):
    """Build fused, MXU-friendly operands (bf16 weights, f32 biases)."""
    w1 = p["w1"].astype(jnp.bfloat16)                                        # (7, 512)
    b1 = p["b1"].astype(jnp.float32)                                         # (1, 512)

    wb = jnp.concatenate([p["wa1"], p["wv1"]], axis=1).astype(jnp.bfloat16)  # (512, 512)
    bb = jnp.concatenate([p["ba1"], p["bv1"]], axis=1).astype(jnp.float32)   # (1, 512)

    wh = jnp.zeros((2 * H2, HEAD_W), jnp.float32)
    # adv head into action lanes (rows 0..255 = adv-hidden part of y)
    wh = wh.at[:H2, :NB_ACTIONS].set(p["wa2"])
    # val head broadcast into all action lanes (rows 256..511 = val-hidden part)
    wh = wh.at[H2:, :NB_ACTIONS].set(jnp.broadcast_to(p["wv2"], (H2, NB_ACTIONS)))
    # adv row-sum column (lane 12) for the global adv.mean()
    wh = wh.at[:H2, NB_ACTIONS].set(jnp.sum(p["wa2"], axis=1))
    wh = wh.astype(jnp.bfloat16)                                             # (512, 128)

    bh = jnp.zeros((1, HEAD_W), jnp.float32)
    bh = bh.at[:, :NB_ACTIONS].set(p["ba2"] + p["bv2"])                      # adv+val bias
    bh = bh.at[:, NB_ACTIONS].set(jnp.sum(p["ba2"]))                         # adv-sum bias
    return w1, b1, wb, bb, wh, bh


def qnet_forward(obs, params):
    """obs: (B, 7) float32. params: dict of per-layer (in, out) weights/biases."""
    B = obs.shape[0]
    w1, b1, wb, bb, wh, bh = _fuse_params(params)

    # Batch tiling: small batches run as a single tile; larger batches stream
    # TB-row tiles while the fused weights stay VMEM-resident.
    TB = min(512, _round_up(max(B, 1), 8))
    n_tiles = pl.cdiv(B, TB)
    B_pad = n_tiles * TB

    obs_p = jnp.pad(obs.astype(jnp.float32), ((0, B_pad - B), (0, 0)))

    kernel = functools.partial(_qnet_kernel, batch=B, tile_b=TB)

    def resident(shape):
        # Whole-array block whose index never changes -> stays VMEM-resident.
        return pl.BlockSpec(shape, lambda i: (0,) * len(shape))

    out_bytes = B_pad * HEAD_W * 4
    weight_bytes = ((w1.size + wb.size + wh.size) * 2
                    + (b1.size + bb.size + bh.size) * 4)
    flops = 2 * B_pad * (OBS_DIM * H1 + H1 * (2 * H2) + (2 * H2) * HEAD_W)

    # TODO(synk): for very large batches (output slab + weights > ~24 MiB) switch
    # to a two-pass (sum-then-normalize) pair of calls so the lane-dense output
    # slab need not stay VMEM-resident across the whole grid.
    out_slab = pl.pallas_call(
        kernel,
        out_shape=jax.ShapeDtypeStruct((B_pad, HEAD_W), jnp.float32),
        grid_spec=pltpu.PrefetchScalarGridSpec(
            num_scalar_prefetch=0,
            grid=(n_tiles,),
            in_specs=[
                pl.BlockSpec((TB, OBS_DIM), lambda i: (i, 0)),   # obs: batch-tiled
                resident(w1.shape), resident(b1.shape),          # weights: resident
                resident(wb.shape), resident(bb.shape),
                resident(wh.shape), resident(bh.shape),
            ],
            out_specs=pl.BlockSpec((B_pad, HEAD_W), lambda i: (0, 0)),
            scratch_shapes=[pltpu.VMEM((1, 1), jnp.float32)],    # global adv sum
        ),
        compiler_params=pltpu.CompilerParams(
            # Sequential: cross-tile adv.mean() accumulation + resident output.
            dimension_semantics=("arbitrary",),
            vmem_limit_bytes=min(32 << 20, out_bytes + (8 << 20)),
        ),
        cost_estimate=pl.CostEstimate(
            flops=flops,
            transcendentals=0,
            bytes_accessed=weight_bytes + obs_p.size * 4 + out_bytes,
        ),
    )(obs_p, w1, b1, wb, bb, wh, bh)

    return out_slab[:B, :NB_ACTIONS]


def init_params(key):
    """Deterministic init mimicking PyTorch Linear (uniform +-1/sqrt(fan_in)).
    Weights stored as (in_features, out_features) - already transposed."""
    def linear(key, fan_in, fan_out):
        kw, kb = jax.random.split(key)
        bound = 1.0 / jnp.sqrt(jnp.float32(fan_in))
        w = jax.random.uniform(kw, (fan_in, fan_out), jnp.float32, -bound, bound)
        b = jax.random.uniform(kb, (1, fan_out), jnp.float32, -bound, bound)
        return w, b

    k1, k2, k3, k4, k5 = jax.random.split(key, 5)
    w1, b1 = linear(k1, OBS_DIM, H1)
    wa1, ba1 = linear(k2, H1, H2)
    wa2, ba2 = linear(k3, H2, NB_ACTIONS)
    wv1, bv1 = linear(k4, H1, H2)
    wv2, bv2 = linear(k5, H2, 1)
    return dict(w1=w1, b1=b1,
                wa1=wa1, ba1=ba1, wa2=wa2, ba2=ba2,
                wv1=wv1, bv1=bv1, wv2=wv2, bv2=bv2)


def qnet_ref(obs, p):
    """Pure-JAX reference with the same numerics as the kernel
    (bf16 MXU inputs, f32 accumulation, global adv mean)."""
    def mm(x, w):
        return jnp.dot(x.astype(jnp.bfloat16), w.astype(jnp.bfloat16),
                       preferred_element_type=jnp.float32)

    h = jnp.maximum(mm(obs, p["w1"]) + p["b1"], 0.0)
    a = jnp.maximum(mm(h, p["wa1"]) + p["ba1"], 0.0)
    adv = mm(a, p["wa2"]) + p["ba2"]
    v = jnp.maximum(mm(h, p["wv1"]) + p["bv1"], 0.0)
    val = mm(v, p["wv2"]) + p["bv2"]
    return val + adv - jnp.mean(adv)


if __name__ == "__main__":
    key = jax.random.PRNGKey(0)
    k_params, k_obs = jax.random.split(key)

    params = init_params(k_params)
    batch = 2
    obs = jax.random.normal(k_obs, (batch, OBS_DIM), jnp.float32)

    out = qnet_forward(obs, params)
    out = jax.block_until_ready(out)

    ref = qnet_ref(obs, params)
    assert out.shape == (batch, NB_ACTIONS)
    assert jnp.allclose(out, ref, atol=2e-3, rtol=2e-3), (out, ref)

    print("KERNEL_OK")
</pallas_src>

<mosaic_0001>
module attributes {stable_mosaic.version = 11 : i64} {
  func.func @_qnet_kernel(%arg0: i32, %arg1: memref<8x7xf32, #tpu.memory_space<vmem>>, %arg2: memref<7x512xbf16, #tpu.memory_space<vmem>>, %arg3: memref<1x512xf32, #tpu.memory_space<vmem>>, %arg4: memref<512x512xbf16, #tpu.memory_space<vmem>>, %arg5: memref<1x512xf32, #tpu.memory_space<vmem>>, %arg6: memref<512x128xbf16, #tpu.memory_space<vmem>>, %arg7: memref<1x128xf32, #tpu.memory_space<vmem>>, %arg8: memref<8x128xf32, #tpu.memory_space<vmem>>, %arg9: memref<1x1xf32, #tpu.memory_space<vmem>>) attributes {dimension_semantics = [#tpu.dimension_semantics<arbitrary>], iteration_bounds = array<i64: 1>, scalar_prefetch = 0 : i64, scratch_operands = 1 : i64, tpu.core_type = #tpu.core_type<tc>, window_params = [{transform_indices = @transform_0, window_bounds = array<i64: 8, 7>}, {pipeline_mode = #tpu.pipeline_mode<synchronous>, transform_indices = @transform_1, window_bounds = array<i64: 7, 512>}, {pipeline_mode = #tpu.pipeline_mode<synchronous>, transform_indices = @transform_2, window_bounds = array<i64: 1, 512>}, {pipeline_mode = #tpu.pipeline_mode<synchronous>, transform_indices = @transform_3, window_bounds = array<i64: 512, 512>}, {pipeline_mode = #tpu.pipeline_mode<synchronous>, transform_indices = @transform_4, window_bounds = array<i64: 1, 512>}, {pipeline_mode = #tpu.pipeline_mode<synchronous>, transform_indices = @transform_5, window_bounds = array<i64: 512, 128>}, {pipeline_mode = #tpu.pipeline_mode<synchronous>, transform_indices = @transform_6, window_bounds = array<i64: 1, 128>}, {pipeline_mode = #tpu.pipeline_mode<synchronous>, transform_indices = @transform_7, window_bounds = array<i64: 8, 128>}]} {
    %c0_i32 = arith.constant 0 : i32
    %0 = arith.cmpi eq, %arg0, %c0_i32 : i32
    %1 = arith.extui %0 : i1 to i32
    %c0_i32_0 = arith.constant 0 : i32
    %2 = arith.cmpi ne, %1, %c0_i32_0 : i32
    scf.if %2 {
      %cst_29 = arith.constant 0.000000e+00 : f32
      %52 = vector.broadcast %cst_29 : f32 to vector<1x1xf32>
      %c0_30 = arith.constant 0 : index
      %c0_31 = arith.constant 0 : index
      %53 = vector.load %arg9[%c0_30, %c0_31] : memref<1x1xf32, #tpu.memory_space<vmem>>, vector<1x1xf32>
      tpu.vector_store %arg9[%c0_30, %c0_31], %52 {strides = array<i32>} : memref<1x1xf32, #tpu.memory_space<vmem>>, vector<1x1xf32>,
    } else {
    }
    %c0 = arith.constant 0 : index
    %c0_1 = arith.constant 0 : index
    %3 = vector.load %arg1[%c0, %c0_1] : memref<8x7xf32, #tpu.memory_space<vmem>>, vector<8x7xf32>
    %4 = arith.truncf %3 : vector<8x7xf32> to vector<8x7xbf16>
    %c0_2 = arith.constant 0 : index
    %c0_3 = arith.constant 0 : index
    %5 = vector.load %arg2[%c0_2, %c0_3] : memref<7x512xbf16, #tpu.memory_space<vmem>>, vector<7x512xbf16>
    %cst = arith.constant dense<0.000000e+00> : vector<8x512xf32>
    %6 = tpu.matmul %4, %5, %cst {dimension_numbers = #tpu.dot_dimension_numbers<[1], [0], [0], [1], [0, 0, 1, 1], [], []>} : vector<8x7xbf16>, vector<7x512xbf16>, vector<8x512xf32> -> vector<8x512xf32>
    %c0_4 = arith.constant 0 : index
    %c0_5 = arith.constant 0 : index
    %7 = vector.load %arg3[%c0_4, %c0_5] : memref<1x512xf32, #tpu.memory_space<vmem>>, vector<1x512xf32>
    %8 = vector.broadcast %7 : vector<1x512xf32> to vector<8x512xf32>
    %9 = arith.addf %6, %8 : vector<8x512xf32>
    %cst_6 = arith.constant 0.000000e+00 : f32
    %10 = vector.broadcast %cst_6 : f32 to vector<8x512xf32>
    %11 = arith.maximumf %9, %10 : vector<8x512xf32>
    %12 = arith.truncf %11 : vector<8x512xf32> to vector<8x512xbf16>
    %c0_7 = arith.constant 0 : index
    %c0_8 = arith.constant 0 : index
    %13 = vector.load %arg4[%c0_7, %c0_8] : memref<512x512xbf16, #tpu.memory_space<vmem>>, vector<512x512xbf16>
    %cst_9 = arith.constant dense<0.000000e+00> : vector<8x512xf32>
    %14 = tpu.matmul %12, %13, %cst_9 {dimension_numbers = #tpu.dot_dimension_numbers<[1], [0], [0], [1], [0, 0, 1, 1], [], []>} : vector<8x512xbf16>, vector<512x512xbf16>, vector<8x512xf32> -> vector<8x512xf32>
    %c0_10 = arith.constant 0 : index
    %c0_11 = arith.constant 0 : index
    %15 = vector.load %arg5[%c0_10, %c0_11] : memref<1x512xf32, #tpu.memory_space<vmem>>, vector<1x512xf32>
    %16 = vector.broadcast %15 : vector<1x512xf32> to vector<8x512xf32>
    %17 = arith.addf %14, %16 : vector<8x512xf32>
    %cst_12 = arith.constant 0.000000e+00 : f32
    %18 = vector.broadcast %cst_12 : f32 to vector<8x512xf32>
    %19 = arith.maximumf %17, %18 : vector<8x512xf32>
    %20 = arith.truncf %19 : vector<8x512xf32> to vector<8x512xbf16>
    %c0_13 = arith.constant 0 : index
    %c0_14 = arith.constant 0 : index
    %21 = vector.load %arg6[%c0_13, %c0_14] : memref<512x128xbf16, #tpu.memory_space<vmem>>, vector<512x128xbf16>
    %cst_15 = arith.constant dense<0.000000e+00> : vector<8x128xf32>
    %22 = tpu.matmul %20, %21, %cst_15 {dimension_numbers = #tpu.dot_dimension_numbers<[1], [0], [0], [1], [0, 0, 1, 1], [], []>} : vector<8x512xbf16>, vector<512x128xbf16>, vector<8x128xf32> -> vector<8x128xf32>
    %c0_16 = arith.constant 0 : index
    %c0_17 = arith.constant 0 : index
    %23 = vector.load %arg7[%c0_16, %c0_17] : memref<1x128xf32, #tpu.memory_space<vmem>>, vector<1x128xf32>
    %24 = vector.broadcast %23 : vector<1x128xf32> to vector<8x128xf32>
    %25 = arith.addf %22, %24 : vector<8x128xf32>
    %26 = tpu.iota {dimensions = array<i32: 1>} : vector<8x128xi32>
    %27 = tpu.iota {dimensions = array<i32: 0>} : vector<8x128xi32>
    %c8_i32 = arith.constant 8 : i32
    %28 = arith.muli %arg0, %c8_i32 : i32
    %29 = vector.broadcast %28 : i32 to vector<8x128xi32>
    %30 = arith.addi %27, %29 : vector<8x128xi32>
    %c12_i32 = arith.constant 12 : i32
    %31 = vector.broadcast %c12_i32 : i32 to vector<8x128xi32>
    %32 = arith.cmpi eq, %26, %31 : vector<8x128xi32>
    %c2_i32 = arith.constant 2 : i32
    %33 = vector.broadcast %c2_i32 : i32 to vector<8x128xi32>
    %34 = arith.cmpi slt, %30, %33 : vector<8x128xi32>
    %35 = arith.andi %32, %34 : vector<8x128xi1>
    %cst_18 = arith.constant 0.000000e+00 : f32
    %36 = vector.broadcast %cst_18 : f32 to vector<8x128xf32>
    %37 = arith.select %35, %25, %36 : vector<8x128xi1>, vector<8x128xf32>
    %cst_19 = arith.constant dense<0.000000e+00> : vector<8xf32>
    %38 = vector.multi_reduction <add>, %37, %cst_19 [1] : vector<8x128xf32> to vector<8xf32>
    %39 = vector.shape_cast %38 : vector<8xf32> to vector<8x1xf32>
    %cst_20 = arith.constant dense<0.000000e+00> : vector<1xf32>
    %40 = vector.multi_reduction <add>, %39, %cst_20 [0] : vector<8x1xf32> to vector<1xf32>
    %41 = vector.shape_cast %40 : vector<1xf32> to vector<1x1xf32>
    %c0_21 = arith.constant 0 : index
    %c0_22 = arith.constant 0 : index
    %42 = vector.load %arg9[%c0_21, %c0_22] : memref<1x1xf32, #tpu.memory_space<vmem>>, vector<1x1xf32>
    %43 = arith.addf %42, %41 : vector<1x1xf32>
    %c0_23 = arith.constant 0 : index
    %c0_24 = arith.constant 0 : index
    %44 = vector.load %arg9[%c0_23, %c0_24] : memref<1x1xf32, #tpu.memory_space<vmem>>, vector<1x1xf32>
    tpu.vector_store %arg9[%c0_23, %c0_24], %43 {strides = array<i32>} : memref<1x1xf32, #tpu.memory_space<vmem>>, vector<1x1xf32>,
    %c8_i32_25 = arith.constant 8 : i32
    %45 = arith.muli %arg0, %c8_i32_25 : i32
    %46 = tpu.assume_multiple %45, 8 : i32
    %47 = arith.index_cast %46 : i32 to index
    %c0_26 = arith.constant 0 : index
    %48 = vector.load %arg8[%47, %c0_26] : memref<8x128xf32, #tpu.memory_space<vmem>>, vector<8x128xf32>
    tpu.vector_store %arg8[%47, %c0_26], %25 {strides = array<i32>} : memref<8x128xf32, #tpu.memory_space<vmem>>, vector<8x128xf32>,
    %c0_i32_27 = arith.constant 0 : i32
    %49 = arith.cmpi eq, %arg0, %c0_i32_27 : i32
    %50 = arith.extui %49 : i1 to i32
    %c0_i32_28 = arith.constant 0 : i32
    %51 = arith.cmpi ne, %50, %c0_i32_28 : i32
    scf.if %51 {
      %c0_29 = arith.constant 0 : index
      %c0_30 = arith.constant 0 : index
      %52 = vector.load %arg9[%c0_29, %c0_30] : memref<1x1xf32, #tpu.memory_space<vmem>>, vector<1x1xf32>
      %cst_31 = arith.constant 0.0416666679 : f32
      %53 = vector.broadcast %cst_31 : f32 to vector<1x1xf32>
      %54 = arith.mulf %52, %53 : vector<1x1xf32>
      %c0_32 = arith.constant 0 : index
      %c0_33 = arith.constant 0 : index
      %55 = vector.load %arg8[%c0_32, %c0_33] : memref<8x128xf32, #tpu.memory_space<vmem>>, vector<8x128xf32>
      %56 = vector.broadcast %54 : vector<1x1xf32> to vector<8x128xf32>
      %57 = arith.subf %55, %56 : vector<8x128xf32>
      %c0_34 = arith.constant 0 : index
      %c0_35 = arith.constant 0 : index
      %58 = vector.load %arg8[%c0_34, %c0_35] : memref<8x128xf32, #tpu.memory_space<vmem>>, vector<8x128xf32>
      tpu.vector_store %arg8[%c0_34, %c0_35], %57 {strides = array<i32>} : memref<8x128xf32, #tpu.memory_space<vmem>>, vector<8x128xf32>,
    } else {
    }
    return
  }
  func.func @transform_0(%arg0: i32) -> (i32, i32) {
    %c0_i32 = arith.constant 0 : i32
    %c0_i32_0 = arith.constant 0 : i32
    return %arg0, %c0_i32 : i32, i32
  }
  func.func @transform_1(%arg0: i32) -> (i32, i32) {
    %c0_i32 = arith.constant 0 : i32
    %c0_i32_0 = arith.constant 0 : i32
    %c0_i32_1 = arith.constant 0 : i32
    return %c0_i32, %c0_i32_0 : i32, i32
  }
  func.func @transform_2(%arg0: i32) -> (i32, i32) {
    %c0_i32 = arith.constant 0 : i32
    %c0_i32_0 = arith.constant 0 : i32
    %c0_i32_1 = arith.constant 0 : i32
    return %c0_i32, %c0_i32_0 : i32, i32
  }
  func.func @transform_3(%arg0: i32) -> (i32, i32) {
    %c0_i32 = arith.constant 0 : i32
    %c0_i32_0 = arith.constant 0 : i32
    %c0_i32_1 = arith.constant 0 : i32
    return %c0_i32, %c0_i32_0 : i32, i32
  }
  func.func @transform_4(%arg0: i32) -> (i32, i32) {
    %c0_i32 = arith.constant 0 : i32
    %c0_i32_0 = arith.constant 0 : i32
    %c0_i32_1 = arith.constant 0 : i32
    return %c0_i32, %c0_i32_0 : i32, i32
  }
  func.func @transform_5(%arg0: i32) -> (i32, i32) {
    %c0_i32 = arith.constant 0 : i32
    %c0_i32_0 = arith.constant 0 : i32
    %c0_i32_1 = arith.constant 0 : i32
    return %c0_i32, %c0_i32_0 : i32, i32
  }
  func.func @transform_6(%arg0: i32) -> (i32, i32) {
    %c0_i32 = arith.constant 0 : i32
    %c0_i32_0 = arith.constant 0 : i32
    %c0_i32_1 = arith.constant 0 : i32
    return %c0_i32, %c0_i32_0 : i32, i32
  }
  func.func @transform_7(%arg0: i32) -> (i32, i32) {
    %c0_i32 = arith.constant 0 : i32
    %c0_i32_0 = arith.constant 0 : i32
    %c0_i32_1 = arith.constant 0 : i32
    return %c0_i32, %c0_i32_0 : i32, i32
  }
}

</mosaic_0001>

<bundles_post_ra>
// kernel: tpu_custom_call.1
= control target key start
LH: loop header
LB: loop body
LE: loop exit
PB: predicated region body
PF: predicated region fallthrough
CT: control target
= control target key end

     0   :  { %12 = vsyncpa [#allocation4], 0  ;;  %s2335_s0 = inlined_call_operand.hbm [shape: f32[8,7], index: 0, kind: input, shape index: {}]   ;;  %s2336_s1 = inlined_call_operand.hbm [shape: bf16[7,512], index: 1, kind: input, shape index: {}]   ;;  %s2337_s2 = inlined_call_operand.vmem [shape: f32[1,512], index: 2, kind: input, shape index: {}]   ;;  %s2338_s3 = inlined_call_operand.hbm [shape: bf16[512,512], index: 3, kind: input, shape index: {}]   ;;  %s2339_s4 = inlined_call_operand.vmem [shape: f32[1,512], index: 4, kind: input, shape index: {}]   ;;  %s2340_s5 = inlined_call_operand.hbm [shape: bf16[512,128], index: 5, kind: input, shape index: {}]   ;;  %s2341_s6 = inlined_call_operand.vmem [shape: f32[1,128], index: 6, kind: input, shape index: {}]   ;;  %s2342_s7 = inlined_call_operand.hbm [shape: f32[8,128], index: 7, kind: output, shape index: {}]  }
   0x1   :  { %13 = vsyncpa [#allocation7], 0 }
   0x2   :  { %14 = vsyncpa [#allocation10], 0 }
   0x3   :  { %15 = vsyncpa [#allocation5], 0  ;;  %s2177_s24 = smov [#allocation6]   ;;  %s2178_s26 = smov [#allocation3]  }
   0x4   :  { %s32_s25 = sshll.u32 %s2177_s24, 4  ;;  %s22_s27 = sshll.u32 %s2178_s26, 4  ;;  %s33_s25 = int_to_ptr.vmem [resolvable:$true] %s32_s25  ;;  %s23_s27 = int_to_ptr.vmem [resolvable:$true] %s22_s27 }
   0x5   :  { %s2059_s30 = scalar_lea.hbm %s2336_s1, 256 }
   0x6   :  { %p2060_p0 = scmp.ne.s32.totalorder %s2336_s1, %s2059_s30  ;;  %p2063_p1 = scmp.lt.u32.totalorder %s2059_s30, %s2336_s1 }
   0x8   :  { %p2065_p2 = pnand %p2063_p1, %p2060_p0 }
   0xa   :  { %2068 = shalt.err (!%p2065_p2)
}
   0xb   :  { %s2069_s12 = scalar_lea.vmem %s33_s25, 256  ;;  %p2074_p4 = scmp.lt.s32.totalorder %s33_s25, %s33_s25 }
   0xc   :  { %p2070_p3 = scmp.ne.s32.totalorder %s33_s25, %s2069_s12  ;;  %p2075_p5 = scmp.lt.s32.totalorder %s2069_s12, %s2069_s12 }
   0xe   :  { %p2076_p6 = por %p2075_p5, %p2074_p4 }
  0x10   :  { %p2077_p7 = pnand %p2076_p6, %p2070_p3 }
  0x12   :  { %2080 = shalt.err (!%p2077_p7)
}
  0x13   :  { %35 = dma.hbm_to_vmem [thread:$0]  %s2336_s1, 256, %s33_s25, [#allocation7]  }
  0x14   :  { %s2081_s17 = scalar_lea.hbm %s2335_s0, 128 }
  0x15   :  { %p2082_p8 = scmp.ne.s32.totalorder %s2335_s0, %s2081_s17  ;;  %p2085_p9 = scmp.lt.u32.totalorder %s2081_s17, %s2335_s0 }
  0x17   :  { %p2087_p10 = pnand %p2085_p9, %p2082_p8 }
  0x19   :  { %2090 = shalt.err (!%p2087_p10)
}
  0x1a   :  { %s2091_s22 = scalar_lea.vmem %s23_s27, 128  ;;  %p2096_p12 = scmp.lt.s32.totalorder %s23_s27, %s23_s27 }
  0x1b   :  { %p2092_p11 = scmp.ne.s32.totalorder %s23_s27, %s2091_s22  ;;  %p2097_p13 = scmp.lt.s32.totalorder %s2091_s22, %s2091_s22 }
  0x1d   :  { %p2098_p0 = por %p2097_p13, %p2096_p12 }
  0x1f   :  { %p2099_p1 = pnand %p2098_p0, %p2092_p11 }
  0x21   :  { %2102 = shalt.err (!%p2099_p1)
}
  0x22   :  { %25 = dma.hbm_to_vmem [thread:$0]  %s2335_s0, 128, %s23_s27, [#allocation4]  }
  0x23   :  { %s2179_s24 = smov [#allocation8]   ;;  %s2103_s29 = scalar_lea.hbm %s2338_s3, 16384 }
  0x24   :  { %s43_s25 = sshll.u32 %s2179_s24, 4  ;;  %p2104_p2 = scmp.ne.s32.totalorder %s2338_s3, %s2103_s29  ;;  %s44_s25 = int_to_ptr.vmem [resolvable:$true] %s43_s25 }
  0x25   :  { %p2107_p3 = scmp.lt.u32.totalorder %s2103_s29, %s2338_s3 }
  0x27   :  { %p2109_p4 = pnand %p2107_p3, %p2104_p2 }
  0x29   :  { %2112 = shalt.err (!%p2109_p4)
}
  0x2a   :  { %s2113_s11 = scalar_lea.vmem %s44_s25, 16384  ;;  %p2118_p6 = scmp.lt.s32.totalorder %s44_s25, %s44_s25 }
  0x2b   :  { %p2114_p5 = scmp.ne.s32.totalorder %s44_s25, %s2113_s11  ;;  %p2119_p7 = scmp.lt.s32.totalorder %s2113_s11, %s2113_s11 }
  0x2d   :  { %p2120_p8 = por %p2119_p7, %p2118_p6 }
  0x2f   :  { %p2121_p9 = pnand %p2120_p8, %p2114_p5 }
  0x31   :  { %2124 = shalt.err (!%p2121_p9)
}
  0x32   :  { %s2180_s0 = smov 256   ;;  %s2181_s27 = smov 16  }
  0x33   :  { %49 = dma.hbm_to_vmem [thread:$0]  %s2338_s3, 16384, %s44_s25, [#allocation7], %s2180_s0, %s2180_s0, %s2181_s27  }
  0x34   :  { %s2182_s14 = smov [#allocation9]   ;;  %s2125_s18 = scalar_lea.hbm %s2340_s5, 4096 }
  0x35   :  { %s57_s15 = sshll.u32 %s2182_s14, 4  ;;  %p2126_p10 = scmp.ne.s32.totalorder %s2340_s5, %s2125_s18  ;;  %s58_s15 = int_to_ptr.vmem [resolvable:$true] %s57_s15 }
  0x36   :  { %p2129_p11 = scmp.lt.u32.totalorder %s2125_s18, %s2340_s5 }
  0x38   :  { %p2131_p12 = pnand %p2129_p11, %p2126_p10 }
  0x3a   :  { %2134 = shalt.err (!%p2131_p12)
}
  0x3b   :  { %s2135_s1 = scalar_lea.vmem %s58_s15, 4096  ;;  %p2140_p0 = scmp.lt.s32.totalorder %s58_s15, %s58_s15 }
  0x3c   :  { %p2136_p13 = scmp.ne.s32.totalorder %s58_s15, %s2135_s1  ;;  %p2141_p1 = scmp.lt.s32.totalorder %s2135_s1, %s2135_s1 }
  0x3e   :  { %p2142_p2 = por %p2141_p1, %p2140_p0 }
  0x40   :  { %p2143_p3 = pnand %p2142_p2, %p2136_p13 }
  0x42   :  { %2146 = shalt.err (!%p2143_p3)
}
  0x43   :  { %s2183_s3 = smov 64   ;;  %s2184_s23 = smov 4  }
  0x44   :  { %63 = dma.hbm_to_vmem [thread:$0]  %s2340_s5, 4096, %s58_s15, [#allocation10], %s2183_s3, %s2183_s3, %s2184_s23  }
  0x45   :  { %2169 = dma.done.wait [#allocation4], 128  }
  0x46   :  { %2170 = vsyncadd [#allocation4], 4294967168 }
  0x47   :  { %2171 = dma.done.wait [#allocation7], 16640  }
  0x48   :  { %2172 = vsyncadd [#allocation7], 4294950656 }
  0x49   :  { %2173 = dma.done.wait [#allocation10], 4096  }
  0x4a   :  { %2174 = vsyncadd [#allocation10], 4294963200  ;;  %vm125_vm0 = vcmask 1042432   ;;  %v2185_v0 = vmov 0   ;;  %vm126_vm1 = vcmask 1043456   ;;  %v2186_v1 = vmov 65535  }
  0x4b   :  { %173 = vmatprep.mubr.bf16.mxu0 %v2185_v0  ;;  %214 = vmatprep.mubr.bf16.mxu1 %v2185_v0  ;;  %v127_v2 = vsel %vm125_vm0, 4294967295, %v2186_v1  ;;  %v87_v3 = vld [vmem:[#allocation6] sm:$0xff]  ;;  %v88_v5 = vld [vmem:[#allocation6 + $0x8] sm:$0xff]  ;;  %v85_v9 = vld [vmem:[#allocation3] sm:$0xff]  ;;  %vm121_vm2 = vcmask 56320   ;;  %vm83_vm3 = vcmask 0  }
  0x4c   :  { %1830 = vset.pattern.permute.xlu0 %v2185_v0  ;;  %v128_v4 = vsel %vm126_vm1, %v127_v2, 0  ;;  %v1596_v6 = vcombine.high %v87_v3, %v87_v3  ;;  %v1595_v7 = vcombine.low %v87_v3, %v87_v3  ;;  %v1598_v8 = vcombine.high %v88_v5, %v88_v5  ;;  %v1837_v14 = vld [vmem:[#allocation8 + $0x4] ss:$16 sps:$4 sm:$0xff]   ;;  %v1840_v15 = vld [vmem:[#allocation8 + $0xc] ss:$16 sps:$4 sm:$0xff]  }
  0x4d   :  { %v1597_v10 = vcombine.low %v88_v5, %v88_v5  ;;  %v86_v17 = vpack.c.bf16 %v85_v9, %v85_v9  ;;  %v1835_v18 = vld [vmem:[#allocation8] ss:$16 sps:$4 sm:$0xff]   ;;  %v1838_v19 = vld [vmem:[#allocation8 + $0x8] ss:$16 sps:$4 sm:$0xff]   ;;  %v1843_v20 = vld [vmem:[#allocation8 + $0x24] ss:$16 sps:$4 sm:$0xff]  }
  0x4e   :  { %v133_v11 = vand.u32 %v1596_v6, %v128_v4  ;;  %v130_v12 = vand.u32 %v1595_v7, %v128_v4  ;;  %v139_v13 = vand.u32 %v1598_v8, %v128_v4  ;;  %v1846_v21 = vld [vmem:[#allocation8 + $0x2c] ss:$16 sps:$4 sm:$0xff]   ;;  %v1841_v22 = vld [vmem:[#allocation8 + $0x20] ss:$16 sps:$4 sm:$0xff]   ;;  %v1844_v23 = vld [vmem:[#allocation8 + $0x28] ss:$16 sps:$4 sm:$0xff]  }
  0x4f   :  { %v136_v16 = vand.u32 %v1597_v10, %v128_v4  ;;  %v1849_v24 = vld [vmem:[#allocation8 + $0x44] ss:$16 sps:$4 sm:$0xff]   ;;  %v1852_v25 = vld [vmem:[#allocation8 + $0x4c] ss:$16 sps:$4 sm:$0xff]   ;;  %v1847_v26 = vld [vmem:[#allocation8 + $0x40] ss:$16 sps:$4 sm:$0xff]  }
  0x50   :  { %141 = vmatprep.subr.bf16.mxu0 %v133_v11  ;;  %182 = vmatprep.subr.bf16.mxu1 %v139_v13  ;;  %v1850_v27 = vld [vmem:[#allocation8 + $0x48] ss:$16 sps:$4 sm:$0xff]   ;;  %v1855_v28 = vld [vmem:[#allocation8 + $0x64] ss:$16 sps:$4 sm:$0xff]   ;;  %v1858_v29 = vld [vmem:[#allocation8 + $0x6c] ss:$16 sps:$4 sm:$0xff]  }
  0x51   :  { %142 = vmatpush1.bf16.msra.mxu0 %v130_v12  ;;  %183 = vmatpush1.bf16.msra.mxu1 %v136_v16  ;;  %v1853_v30 = vld [vmem:[#allocation8 + $0x60] ss:$16 sps:$4 sm:$0xff]   ;;  %v1856_v31 = vld [vmem:[#allocation8 + $0x68] ss:$16 sps:$4 sm:$0xff]   ;;  %v1861_v32 = vld [vmem:[#allocation8 + $0x84] ss:$16 sps:$4 sm:$0xff]  }
  0x52   :  { %1021 = vmatprep.subr.bf16.mxu0 %v1837_v14  ;;  %1103 = vmatprep.subr.bf16.mxu1 %v1840_v15  ;;  %v1864_v33 = vld [vmem:[#allocation8 + $0x8c] ss:$16 sps:$4 sm:$0xff]   ;;  %v1859_v34 = vld [vmem:[#allocation8 + $0x80] ss:$16 sps:$4 sm:$0xff]   ;;  %v1862_v35 = vld [vmem:[#allocation8 + $0x88] ss:$16 sps:$4 sm:$0xff]  }
  0x53   :  { %v1867_v36 = vld [vmem:[#allocation8 + $0xa4] ss:$16 sps:$4 sm:$0xff]   ;;  %v1870_v37 = vld [vmem:[#allocation8 + $0xac] ss:$16 sps:$4 sm:$0xff]   ;;  %v1865_v38 = vld [vmem:[#allocation8 + $0xa0] ss:$16 sps:$4 sm:$0xff]  }
  0x54   :  { %1599 = vmatmul.mubr.msk.bf16.vlgmr.msra.gmra.mrb[0].mxu0 %vm121_vm2, %v86_v17  ;;  %1600 = vmatmul.mubr.msk.bf16.vlgmr.msra.gmra.mrb[0].mxu1 %vm121_vm2, %v86_v17  ;;  %v1868_v39 = vld [vmem:[#allocation8 + $0xa8] ss:$16 sps:$4 sm:$0xff]   ;;  %v1873_v40 = vld [vmem:[#allocation8 + $0xc4] ss:$16 sps:$4 sm:$0xff]   ;;  %v1876_v41 = vld [vmem:[#allocation8 + $0xcc] ss:$16 sps:$4 sm:$0xff]  }
  0x55   :  { %1022 = vmatpush1.bf16.msra.mxu0 %v1835_v18  ;;  %1104 = vmatpush1.bf16.msra.mxu1 %v1838_v19  ;;  %v1871_v42 = vld [vmem:[#allocation8 + $0xc0] ss:$16 sps:$4 sm:$0xff]   ;;  %v1874_v43 = vld [vmem:[#allocation8 + $0xc8] ss:$16 sps:$4 sm:$0xff]   ;;  %v1879_v44 = vld [vmem:[#allocation8 + $0xe4] ss:$16 sps:$4 sm:$0xff]   ;;  %v91_v18 = vlaneseq }
  0x56   :  { %1023 = vmatprep.subr.bf16.mxu0 %v1843_v20  ;;  %1105 = vmatprep.subr.bf16.mxu1 %v1846_v21  ;;  %v1882_v45 = vld [vmem:[#allocation8 + $0xec] ss:$16 sps:$4 sm:$0xff]   ;;  %v1877_v46 = vld [vmem:[#allocation8 + $0xe0] ss:$16 sps:$4 sm:$0xff]   ;;  %v1880_v47 = vld [vmem:[#allocation8 + $0xe8] ss:$16 sps:$4 sm:$0xff]  }
  0x57   :  { %v1885_v48 = vld [vmem:[#allocation8 + $0x104] ss:$16 sps:$4 sm:$0xff]   ;;  %v1888_v49 = vld [vmem:[#allocation8 + $0x10c] ss:$16 sps:$4 sm:$0xff]   ;;  %v1883_v50 = vld [vmem:[#allocation8 + $0x100] ss:$16 sps:$4 sm:$0xff]  }
  0x58   :  { %v1886_v51 = vld [vmem:[#allocation8 + $0x108] ss:$16 sps:$4 sm:$0xff]   ;;  %v1891_v52 = vld [vmem:[#allocation8 + $0x124] ss:$16 sps:$4 sm:$0xff]   ;;  %v1894_v53 = vld [vmem:[#allocation8 + $0x12c] ss:$16 sps:$4 sm:$0xff]  }
  0x59   :  { %1024 = vmatpush1.bf16.msra.mxu0 %v1841_v22  ;;  %1106 = vmatpush1.bf16.msra.mxu1 %v1844_v23  ;;  %v1889_v54 = vld [vmem:[#allocation8 + $0x120] ss:$16 sps:$4 sm:$0xff]   ;;  %v1892_v55 = vld [vmem:[#allocation8 + $0x128] ss:$16 sps:$4 sm:$0xff]   ;;  %v1897_v56 = vld [vmem:[#allocation8 + $0x144] ss:$16 sps:$4 sm:$0xff]  }
  0x5a   :  { %1025 = vmatprep.subr.bf16.mxu0 %v1849_v24  ;;  %1107 = vmatprep.subr.bf16.mxu1 %v1852_v25  ;;  %v1900_v57 = vld [vmem:[#allocation8 + $0x14c] ss:$16 sps:$4 sm:$0xff]   ;;  %v1895_v58 = vld [vmem:[#allocation8 + $0x140] ss:$16 sps:$4 sm:$0xff]   ;;  %v1898_v59 = vld [vmem:[#allocation8 + $0x148] ss:$16 sps:$4 sm:$0xff]  }
  0x5b   :  { %v1903_v60 = vld [vmem:[#allocation8 + $0x164] ss:$16 sps:$4 sm:$0xff]   ;;  %v1906_v61 = vld [vmem:[#allocation8 + $0x16c] ss:$16 sps:$4 sm:$0xff]   ;;  %v1901_v62 = vld [vmem:[#allocation8 + $0x160] ss:$16 sps:$4 sm:$0xff]  }
  0x5c   :  { %v1904_v63 = vld [vmem:[#allocation8 + $0x168] ss:$16 sps:$4 sm:$0xff]   ;;  %v1909_v0 = vld [vmem:[#allocation8 + $0x184] ss:$16 sps:$4 sm:$0xff]   ;;  %v1912_v1 = vld [vmem:[#allocation8 + $0x18c] ss:$16 sps:$4 sm:$0xff]  }
  0x5d   :  { %1026 = vmatpush1.bf16.msra.mxu0 %v1847_v26  ;;  %1108 = vmatpush1.bf16.msra.mxu1 %v1850_v27  ;;  %v1907_v2 = vld [vmem:[#allocation8 + $0x180] ss:$16 sps:$4 sm:$0xff]   ;;  %v1910_v3 = vld [vmem:[#allocation8 + $0x188] ss:$16 sps:$4 sm:$0xff]   ;;  %v1915_v4 = vld [vmem:[#allocation8 + $0x1a4] ss:$16 sps:$4 sm:$0xff]  }
  0x5e   :  { %1027 = vmatprep.subr.bf16.mxu0 %v1855_v28  ;;  %1109 = vmatprep.subr.bf16.mxu1 %v1858_v29  ;;  %v1918_v5 = vld [vmem:[#allocation8 + $0x1ac] ss:$16 sps:$4 sm:$0xff]   ;;  %v1913_v6 = vld [vmem:[#allocation8 + $0x1a0] ss:$16 sps:$4 sm:$0xff]   ;;  %v1916_v7 = vld [vmem:[#allocation8 + $0x1a8] ss:$16 sps:$4 sm:$0xff]  }
  0x5f   :  { %v1921_v8 = vld [vmem:[#allocation8 + $0x1c4] ss:$16 sps:$4 sm:$0xff]   ;;  %v1924_v9 = vld [vmem:[#allocation8 + $0x1cc] ss:$16 sps:$4 sm:$0xff]   ;;  %v1919_v10 = vld [vmem:[#allocation8 + $0x1c0] ss:$16 sps:$4 sm:$0xff]  }
  0x60   :  { %v1922_v11 = vld [vmem:[#allocation8 + $0x1c8] ss:$16 sps:$4 sm:$0xff]   ;;  %v1927_v12 = vld [vmem:[#allocation8 + $0x1e4] ss:$16 sps:$4 sm:$0xff]   ;;  %v1930_v13 = vld [vmem:[#allocation8 + $0x1ec] ss:$16 sps:$4 sm:$0xff]  }
  0x61   :  { %1028 = vmatpush1.bf16.msra.mxu0 %v1853_v30  ;;  %1110 = vmatpush1.bf16.msra.mxu1 %v1856_v31  ;;  %v1925_v14 = vld [vmem:[#allocation8 + $0x1e0] ss:$16 sps:$4 sm:$0xff]   ;;  %v1928_v15 = vld [vmem:[#allocation8 + $0x1e8] ss:$16 sps:$4 sm:$0xff]   ;;  %v1933_v16 = vld [vmem:[#allocation8 + $0x204] ss:$16 sps:$4 sm:$0xff]  }
  0x62   :  { %1029 = vmatprep.subr.bf16.mxu0 %v1861_v32  ;;  %1111 = vmatprep.subr.bf16.mxu1 %v1864_v33  ;;  %v1936_v17 = vld [vmem:[#allocation8 + $0x20c] ss:$16 sps:$4 sm:$0xff]   ;;  %v2278_v19 = vshrl.u32 %v91_v18, 7  ;;  %v2286_v21 = vld [vmem:[%s2337_s2] sm:$0xf] }
  0x64   :  { %v2281_v20 = vsub.s32 0, %v2278_v19  ;;  %v97_v22 = vsub.s32 1, %v2278_v19  ;;  %v105_v23 = vsub.s32 3, %v2278_v19  ;;  %vm1544_vm5 = vcmp.lt.s32.totalorder %v2278_v19, 2 }
  0x65   :  { %1030 = vmatpush1.bf16.msra.mxu0 %v1859_v34  ;;  %1112 = vmatpush1.bf16.msra.mxu1 %v1862_v35 }
  0x66   :  { %1031 = vmatprep.subr.bf16.mxu0 %v1867_v36  ;;  %1113 = vmatprep.subr.bf16.mxu1 %v1870_v37  ;;  %v94_v24 = vrot.slane %v2286_v21, %v2281_v20  ;;  %v98_v25 = vrot.slane %v2286_v21, %v97_v22  ;;  %v106_v26 = vrot.slane %v2286_v21, %v105_v23 }
  0x69   :  { %1032 = vmatpush1.bf16.msra.mxu0 %v1865_v38  ;;  %1114 = vmatpush1.bf16.msra.mxu1 %v1868_v39 }
  0x6a   :  { %1033 = vmatprep.subr.bf16.mxu0 %v1873_v40  ;;  %1115 = vmatprep.subr.bf16.mxu1 %v1876_v41 }
  0x6d   :  { %1034 = vmatpush1.bf16.msra.mxu0 %v1871_v42  ;;  %1116 = vmatpush1.bf16.msra.mxu1 %v1874_v43  ;;  %v1931_v42 = vld [vmem:[#allocation8 + $0x200] ss:$16 sps:$4 sm:$0xff]   ;;  %v1934_v43 = vld [vmem:[#allocation8 + $0x208] ss:$16 sps:$4 sm:$0xff]  }
  0x6e   :  { %1035 = vmatprep.subr.bf16.mxu0 %v1879_v44  ;;  %1117 = vmatprep.subr.bf16.mxu1 %v1882_v45  ;;  %v1939_v45 = vld [vmem:[#allocation8 + $0x224] ss:$16 sps:$4 sm:$0xff]  }
  0x71   :  { %1036 = vmatpush1.bf16.msra.mxu0 %v1877_v46  ;;  %1118 = vmatpush1.bf16.msra.mxu1 %v1880_v47  ;;  %v1942_v46 = vld [vmem:[#allocation8 + $0x22c] ss:$16 sps:$4 sm:$0xff]  }
  0x72   :  { %1037 = vmatprep.subr.bf16.mxu0 %v1885_v48  ;;  %1119 = vmatprep.subr.bf16.mxu1 %v1888_v49  ;;  %v1937_v48 = vld [vmem:[#allocation8 + $0x220] ss:$16 sps:$4 sm:$0xff]   ;;  %v1940_v49 = vld [vmem:[#allocation8 + $0x228] ss:$16 sps:$4 sm:$0xff]  }
  0x75   :  { %1038 = vmatpush1.bf16.msra.mxu0 %v1883_v50  ;;  %1120 = vmatpush1.bf16.msra.mxu1 %v1886_v51  ;;  %v1945_v50 = vld [vmem:[#allocation8 + $0x244] ss:$16 sps:$4 sm:$0xff]   ;;  %v1948_v51 = vld [vmem:[#allocation8 + $0x24c] ss:$16 sps:$4 sm:$0xff]  }
  0x76   :  { %1039 = vmatprep.subr.bf16.mxu0 %v1891_v52  ;;  %1121 = vmatprep.subr.bf16.mxu1 %v1894_v53  ;;  %v1943_v52 = vld [vmem:[#allocation8 + $0x240] ss:$16 sps:$4 sm:$0xff]   ;;  %v1946_v53 = vld [vmem:[#allocation8 + $0x248] ss:$16 sps:$4 sm:$0xff]  }
  0x79   :  { %1040 = vmatpush1.bf16.msra.mxu0 %v1889_v54  ;;  %1122 = vmatpush1.bf16.msra.mxu1 %v1892_v55  ;;  %v1951_v54 = vld [vmem:[#allocation8 + $0x264] ss:$16 sps:$4 sm:$0xff]   ;;  %v1954_v55 = vld [vmem:[#allocation8 + $0x26c] ss:$16 sps:$4 sm:$0xff]  }
  0x7a   :  { %1041 = vmatprep.subr.bf16.mxu0 %v1897_v56  ;;  %1123 = vmatprep.subr.bf16.mxu1 %v1900_v57  ;;  %v1949_v56 = vld [vmem:[#allocation8 + $0x260] ss:$16 sps:$4 sm:$0xff]   ;;  %v1952_v57 = vld [vmem:[#allocation8 + $0x268] ss:$16 sps:$4 sm:$0xff]  }
  0x7d   :  { %1042 = vmatpush1.bf16.msra.mxu0 %v1895_v58  ;;  %1124 = vmatpush1.bf16.msra.mxu1 %v1898_v59  ;;  %v1957_v58 = vld [vmem:[#allocation8 + $0x284] ss:$16 sps:$4 sm:$0xff]   ;;  %v1960_v59 = vld [vmem:[#allocation8 + $0x28c] ss:$16 sps:$4 sm:$0xff]  }
  0x7e   :  { %1043 = vmatprep.subr.bf16.mxu0 %v1903_v60  ;;  %1125 = vmatprep.subr.bf16.mxu1 %v1906_v61  ;;  %v1955_v60 = vld [vmem:[#allocation8 + $0x280] ss:$16 sps:$4 sm:$0xff]   ;;  %v1958_v61 = vld [vmem:[#allocation8 + $0x288] ss:$16 sps:$4 sm:$0xff]  }
  0x81   :  { %1044 = vmatpush1.bf16.msra.mxu0 %v1901_v62  ;;  %1126 = vmatpush1.bf16.msra.mxu1 %v1904_v63  ;;  %v1963_v62 = vld [vmem:[#allocation8 + $0x2a4] ss:$16 sps:$4 sm:$0xff]   ;;  %v1966_v63 = vld [vmem:[#allocation8 + $0x2ac] ss:$16 sps:$4 sm:$0xff]  }
  0x82   :  { %1045 = vmatprep.subr.bf16.mxu0 %v1909_v0  ;;  %1127 = vmatprep.subr.bf16.mxu1 %v1912_v1  ;;  %v1961_v0 = vld [vmem:[#allocation8 + $0x2a0] ss:$16 sps:$4 sm:$0xff]   ;;  %v1964_v1 = vld [vmem:[#allocation8 + $0x2a8] ss:$16 sps:$4 sm:$0xff]  }
  0x85   :  { %1046 = vmatpush1.bf16.msra.mxu0 %v1907_v2  ;;  %1128 = vmatpush1.bf16.msra.mxu1 %v1910_v3  ;;  %v1969_v2 = vld [vmem:[#allocation8 + $0x2c4] ss:$16 sps:$4 sm:$0xff]   ;;  %v1972_v3 = vld [vmem:[#allocation8 + $0x2cc] ss:$16 sps:$4 sm:$0xff]  }
  0x86   :  { %1047 = vmatprep.subr.bf16.mxu0 %v1915_v4  ;;  %1129 = vmatprep.subr.bf16.mxu1 %v1918_v5  ;;  %v1967_v4 = vld [vmem:[#allocation8 + $0x2c0] ss:$16 sps:$4 sm:$0xff]   ;;  %v1970_v5 = vld [vmem:[#allocation8 + $0x2c8] ss:$16 sps:$4 sm:$0xff]  }
  0x89   :  { %1048 = vmatpush1.bf16.msra.mxu0 %v1913_v6  ;;  %1130 = vmatpush1.bf16.msra.mxu1 %v1916_v7  ;;  %v1975_v6 = vld [vmem:[#allocation8 + $0x2e4] ss:$16 sps:$4 sm:$0xff]   ;;  %v1978_v7 = vld [vmem:[#allocation8 + $0x2ec] ss:$16 sps:$4 sm:$0xff]  }
  0x8a   :  { %1049 = vmatprep.subr.bf16.mxu0 %v1921_v8  ;;  %1131 = vmatprep.subr.bf16.mxu1 %v1924_v9  ;;  %v1973_v8 = vld [vmem:[#allocation8 + $0x2e0] ss:$16 sps:$4 sm:$0xff]   ;;  %v1976_v9 = vld [vmem:[#allocation8 + $0x2e8] ss:$16 sps:$4 sm:$0xff]  }
  0x8d   :  { %1050 = vmatpush1.bf16.msra.mxu0 %v1919_v10  ;;  %1132 = vmatpush1.bf16.msra.mxu1 %v1922_v11  ;;  %v1981_v10 = vld [vmem:[#allocation8 + $0x304] ss:$16 sps:$4 sm:$0xff]   ;;  %v1984_v11 = vld [vmem:[#allocation8 + $0x30c] ss:$16 sps:$4 sm:$0xff]  }
  0x8e   :  { %1051 = vmatprep.subr.bf16.mxu0 %v1927_v12  ;;  %1133 = vmatprep.subr.bf16.mxu1 %v1930_v13  ;;  %v1979_v12 = vld [vmem:[#allocation8 + $0x300] ss:$16 sps:$4 sm:$0xff]   ;;  %v1982_v13 = vld [vmem:[#allocation8 + $0x308] ss:$16 sps:$4 sm:$0xff]  }
  0x91   :  { %1052 = vmatpush1.bf16.msra.mxu0 %v1925_v14  ;;  %1134 = vmatpush1.bf16.msra.mxu1 %v1928_v15  ;;  %v1987_v14 = vld [vmem:[#allocation8 + $0x324] ss:$16 sps:$4 sm:$0xff]   ;;  %v1990_v15 = vld [vmem:[#allocation8 + $0x32c] ss:$16 sps:$4 sm:$0xff]  }
  0x92   :  { %1062 = vmatprep.subr.bf16.mxu0 %v1933_v16  ;;  %1144 = vmatprep.subr.bf16.mxu1 %v1936_v17  ;;  %v1985_v16 = vld [vmem:[#allocation8 + $0x320] ss:$16 sps:$4 sm:$0xff]   ;;  %v1988_v17 = vld [vmem:[#allocation8 + $0x328] ss:$16 sps:$4 sm:$0xff]  }
 0x127   :  { %v175_v27 = vpop.f32.mrb[0].mxu0  ;;  %v2298_v28 = vpop.f32.mrb[0].mxu1 }
 0x128   :  { %v176_v29 = vadd.f32 %v175_v27, %v94_v24  ;;  %v177_v30 = vpop.f32.mrb[1].mxu0  ;;  %v218_v31 = vpop.f32.mrb[1].mxu1  ;;  %v1993_v24 = vld [vmem:[#allocation8 + $0x344] ss:$16 sps:$4 sm:$0xff]   ;;  %v1994_v27 = vld [vmem:[#allocation8 + $0x348] ss:$16 sps:$4 sm:$0xff]  }
 0x129   :  { %v178_v32 = vadd.f32 %v177_v30, %v98_v25  ;;  %v179_v33 = vpop.f32.mrb[2].mxu0  ;;  %v219_v34 = vadd.f32 %v218_v31, %v106_v26  ;;  %v220_v35 = vpop.f32.mrb[2].mxu1  ;;  %v1996_v25 = vld [vmem:[#allocation8 + $0x34c] ss:$16 sps:$4 sm:$0xff]   ;;  %v1991_v26 = vld [vmem:[#allocation8 + $0x340] ss:$16 sps:$4 sm:$0xff]  }
 0x12a   :  { %v223_v36 = vmax.f32 %v176_v29, 0.0  ;;  %v180_v37 = vpop.f32.mrb[3].mxu0  ;;  %v221_v38 = vpop.f32.mrb[3].mxu1  ;;  %v1999_v29 = vld [vmem:[#allocation8 + $0x364] ss:$16 sps:$4 sm:$0xff]  }
 0x12b   :  { %v224_v39 = vmax.f32 %v178_v32, 0.0  ;;  %v226_v40 = vmax.f32 %v219_v34, 0.0  ;;  %v2002_v30 = vld [vmem:[#allocation8 + $0x36c] ss:$16 sps:$4 sm:$0xff]   ;;  %v1997_v31 = vld [vmem:[#allocation8 + $0x360] ss:$16 sps:$4 sm:$0xff]  }
 0x12c   :  { %v227_v44 = vpack.c.bf16 %v223_v36, %v223_v36  ;;  %v2000_v32 = vld [vmem:[#allocation8 + $0x368] ss:$16 sps:$4 sm:$0xff]   ;;  %v2005_v33 = vld [vmem:[#allocation8 + $0x384] ss:$16 sps:$4 sm:$0xff]   ;;  %v2008_v34 = vld [vmem:[#allocation8 + $0x38c] ss:$16 sps:$4 sm:$0xff]  }
 0x12d   :  { %v228_v41 = vpack.c.bf16 %v224_v39, %v224_v39  ;;  %v230_v47 = vpack.c.bf16 %v226_v40, %v226_v40  ;;  %v2003_v35 = vld [vmem:[#allocation8 + $0x380] ss:$16 sps:$4 sm:$0xff]   ;;  %v2006_v36 = vld [vmem:[#allocation8 + $0x388] ss:$16 sps:$4 sm:$0xff]   ;;  %v101_v37 = vsub.s32 2, %v2278_v19 }
 0x12e   :  { %v2011_v38 = vld [vmem:[#allocation8 + $0x3a4] ss:$16 sps:$4 sm:$0xff]   ;;  %v2014_v39 = vld [vmem:[#allocation8 + $0x3ac] ss:$16 sps:$4 sm:$0xff]   ;;  %v2009_v40 = vld [vmem:[#allocation8 + $0x3a0] ss:$16 sps:$4 sm:$0xff]  }
 0x12f   :  { %1053 = vmatprep.mubr.bf16.mxu0 %v228_v41  ;;  %1135 = vmatprep.mubr.bf16.mxu1 %v228_v41  ;;  %v2012_v41 = vld [vmem:[#allocation8 + $0x3a8] ss:$16 sps:$4 sm:$0xff]  }
 0x130   :  { %1054 = vmatmul.mubr.bf16.vlgmr.msra.gmra.mrb[4].mxu0 %v227_v44  ;;  %1136 = vmatmul.mubr.bf16.vlgmr.msra.gmra.mrb[4].mxu1 %v227_v44  ;;  %v2020_v44 = vld [vmem:[#allocation8 + $0x3cc] ss:$16 sps:$4 sm:$0xff]  }
 0x131   :  { %1063 = vmatpush1.bf16.msra.mxu0 %v1931_v42  ;;  %1145 = vmatpush1.bf16.msra.mxu1 %v1934_v43  ;;  %v102_v42 = vrot.slane %v2286_v21, %v101_v37  ;;  %v2017_v43 = vld [vmem:[#allocation8 + $0x3c4] ss:$16 sps:$4 sm:$0xff]  }
 0x132   :  { %1064 = vmatprep.subr.bf16.mxu0 %v1939_v45  ;;  %1146 = vmatprep.subr.bf16.mxu1 %v1942_v46  ;;  %v2015_v45 = vld [vmem:[#allocation8 + $0x3c0] ss:$16 sps:$4 sm:$0xff]   ;;  %v2018_v46 = vld [vmem:[#allocation8 + $0x3c8] ss:$16 sps:$4 sm:$0xff]  }
 0x133   :  { %1094 = vmatprep.mubr.bf16.mxu0 %v230_v47  ;;  %1176 = vmatprep.mubr.bf16.mxu1 %v230_v47  ;;  %v217_v47 = vadd.f32 %v2298_v28, %v102_v42  ;;  %v2027_v21 = vld [vmem:[#allocation9 + $0x40] sm:$0xff]   ;;  %v2031_v28 = vld [vmem:[#allocation9 + $0x48] sm:$0xff]  }
 0x135   :  { %1065 = vmatpush1.bf16.msra.mxu0 %v1937_v48  ;;  %1147 = vmatpush1.bf16.msra.mxu1 %v1940_v49  ;;  %v2023_v48 = vld [vmem:[#allocation8 + $0x3e4] ss:$16 sps:$4 sm:$0xff]   ;;  %v2026_v49 = vld [vmem:[#allocation8 + $0x3ec] ss:$16 sps:$4 sm:$0xff]  }
 0x136   :  { %1066 = vmatprep.subr.bf16.mxu0 %v1945_v50  ;;  %1148 = vmatprep.subr.bf16.mxu1 %v1948_v51  ;;  %v2021_v50 = vld [vmem:[#allocation8 + $0x3e0] ss:$16 sps:$4 sm:$0xff]   ;;  %v2024_v51 = vld [vmem:[#allocation8 + $0x3e8] ss:$16 sps:$4 sm:$0xff]  }
 0x139   :  { %1067 = vmatpush1.bf16.msra.mxu0 %v1943_v52  ;;  %1149 = vmatpush1.bf16.msra.mxu1 %v1946_v53  ;;  %v225_v52 = vmax.f32 %v217_v47, 0.0  ;;  %v2028_v53 = vld [vmem:[#allocation9 + $0xc0] sm:$0xff]  }
 0x13a   :  { %1068 = vmatprep.subr.bf16.mxu0 %v1951_v54  ;;  %1150 = vmatprep.subr.bf16.mxu1 %v1954_v55  ;;  %v2029_v54 = vld [vmem:[#allocation9] sm:$0xff]  }
 0x13b   :  { %v2030_v55 = vld [vmem:[#allocation9 + $0x80] sm:$0xff]  }
 0x13d   :  { %1069 = vmatpush1.bf16.msra.mxu0 %v1949_v56  ;;  %1151 = vmatpush1.bf16.msra.mxu1 %v1952_v57  ;;  %v229_v56 = vpack.c.bf16 %v225_v52, %v225_v52  ;;  %v2032_v57 = vld [vmem:[#allocation9 + $0xc8] sm:$0xff]  }
 0x13e   :  { %1070 = vmatprep.subr.bf16.mxu0 %v1957_v58  ;;  %1152 = vmatprep.subr.bf16.mxu1 %v1960_v59  ;;  %v2033_v58 = vld [vmem:[#allocation9 + $0x8] sm:$0xff]  }
 0x13f   :  { %v2034_v59 = vld [vmem:[#allocation9 + $0x88] sm:$0xff]  }
 0x141   :  { %1071 = vmatpush1.bf16.msra.mxu0 %v1955_v60  ;;  %1153 = vmatpush1.bf16.msra.mxu1 %v1958_v61  ;;  %v2035_v60 = vld [vmem:[#allocation9 + $0x50] sm:$0xff]  }
 0x142   :  { %1072 = vmatprep.subr.bf16.mxu0 %v1963_v62  ;;  %1154 = vmatprep.subr.bf16.mxu1 %v1966_v63  ;;  %v2036_v61 = vld [vmem:[#allocation9 + $0xd0] sm:$0xff]  }
 0x143   :  { %v2037_v62 = vld [vmem:[#allocation9 + $0x10] sm:$0xff]  }
 0x144   :  { %v2038_v63 = vld [vmem:[#allocation9 + $0x90] sm:$0xff]  }
 0x145   :  { %1073 = vmatpush1.bf16.msra.mxu0 %v1961_v0  ;;  %1155 = vmatpush1.bf16.msra.mxu1 %v1964_v1  ;;  %v2039_v0 = vld [vmem:[#allocation9 + $0x58] sm:$0xff]  }
 0x146   :  { %1074 = vmatprep.subr.bf16.mxu0 %v1969_v2  ;;  %1156 = vmatprep.subr.bf16.mxu1 %v1972_v3  ;;  %v2040_v1 = vld [vmem:[#allocation9 + $0xd8] sm:$0xff]  }
 0x147   :  { %v2041_v2 = vld [vmem:[#allocation9 + $0x18] sm:$0xff]  }
 0x148   :  { %v2042_v3 = vld [vmem:[#allocation9 + $0x98] sm:$0xff]  }
 0x149   :  { %1075 = vmatpush1.bf16.msra.mxu0 %v1967_v4  ;;  %1157 = vmatpush1.bf16.msra.mxu1 %v1970_v5  ;;  %v2043_v4 = vld [vmem:[#allocation9 + $0x60] sm:$0xff]  }
 0x14a   :  { %1076 = vmatprep.subr.bf16.mxu0 %v1975_v6  ;;  %1158 = vmatprep.subr.bf16.mxu1 %v1978_v7  ;;  %v2044_v5 = vld [vmem:[#allocation9 + $0xe0] sm:$0xff]  }
 0x14b   :  { %v2045_v6 = vld [vmem:[#allocation9 + $0x20] sm:$0xff]  }
 0x14c   :  { %v2046_v7 = vld [vmem:[#allocation9 + $0xa0] sm:$0xff]  }
 0x14d   :  { %1077 = vmatpush1.bf16.msra.mxu0 %v1973_v8  ;;  %1159 = vmatpush1.bf16.msra.mxu1 %v1976_v9  ;;  %v2047_v8 = vld [vmem:[#allocation9 + $0x68] sm:$0xff]  }
 0x14e   :  { %1078 = vmatprep.subr.bf16.mxu0 %v1981_v10  ;;  %1160 = vmatprep.subr.bf16.mxu1 %v1984_v11  ;;  %v2048_v9 = vld [vmem:[#allocation9 + $0xe8] sm:$0xff]  }
 0x14f   :  { %v2049_v10 = vld [vmem:[#allocation9 + $0x28] sm:$0xff]  }
 0x150   :  { %v2050_v11 = vld [vmem:[#allocation9 + $0xa8] sm:$0xff]  }
 0x151   :  { %1079 = vmatpush1.bf16.msra.mxu0 %v1979_v12  ;;  %1161 = vmatpush1.bf16.msra.mxu1 %v1982_v13  ;;  %v2051_v12 = vld [vmem:[#allocation9 + $0x70] sm:$0xff]  }
 0x152   :  { %1080 = vmatprep.subr.bf16.mxu0 %v1987_v14  ;;  %1162 = vmatprep.subr.bf16.mxu1 %v1990_v15  ;;  %v2052_v13 = vld [vmem:[#allocation9 + $0xf0] sm:$0xff]  }
 0x153   :  { %v2053_v14 = vld [vmem:[#allocation9 + $0x30] sm:$0xff]  }
 0x154   :  { %v2054_v15 = vld [vmem:[#allocation9 + $0xb0] sm:$0xff]  }
 0x155   :  { %1081 = vmatpush1.bf16.msra.mxu0 %v1985_v16  ;;  %1163 = vmatpush1.bf16.msra.mxu1 %v1988_v17  ;;  %v2055_v16 = vld [vmem:[#allocation9 + $0x78] sm:$0xff]  }
 0x156   :  { %1082 = vmatprep.subr.bf16.mxu0 %v1993_v24  ;;  %1164 = vmatprep.subr.bf16.mxu1 %v1996_v25  ;;  %v2056_v17 = vld [vmem:[#allocation9 + $0xf8] sm:$0xff]  }
 0x157   :  { %v2057_v24 = vld [vmem:[#allocation9 + $0x38] sm:$0xff]  }
 0x158   :  { %v2058_v25 = vld [vmem:[#allocation9 + $0xb8] sm:$0xff]  }
 0x159   :  { %1083 = vmatpush1.bf16.msra.mxu0 %v1991_v26  ;;  %1165 = vmatpush1.bf16.msra.mxu1 %v1994_v27  ;;  %v359_v26 = vld [vmem:[%s2339_s4] sm:$0xf] }
 0x15a   :  { %1084 = vmatprep.subr.bf16.mxu0 %v1999_v29  ;;  %1166 = vmatprep.subr.bf16.mxu1 %v2002_v30  ;;  %v364_v27 = vrot.slane %v359_v26, %v2281_v20  ;;  %v372_v29 = vrot.slane %v359_v26, %v101_v37  ;;  %v368_v30 = vrot.slane %v359_v26, %v97_v22 }
 0x15d   :  { %1085 = vmatpush1.bf16.msra.mxu0 %v1997_v31  ;;  %1167 = vmatpush1.bf16.msra.mxu1 %v2000_v32  ;;  %v376_v31 = vrot.slane %v359_v26, %v105_v23 }
 0x15e   :  { %1086 = vmatprep.subr.bf16.mxu0 %v2005_v33  ;;  %1168 = vmatprep.subr.bf16.mxu1 %v2008_v34 }
 0x161   :  { %1087 = vmatpush1.bf16.msra.mxu0 %v2003_v35  ;;  %1169 = vmatpush1.bf16.msra.mxu1 %v2006_v36 }
 0x162   :  { %1088 = vmatprep.subr.bf16.mxu0 %v2011_v38  ;;  %1170 = vmatprep.subr.bf16.mxu1 %v2014_v39 }
 0x165   :  { %1089 = vmatpush1.bf16.msra.mxu0 %v2009_v40  ;;  %1171 = vmatpush1.bf16.msra.mxu1 %v2012_v41 }
 0x166   :  { %1090 = vmatprep.subr.bf16.mxu0 %v2017_v43  ;;  %1172 = vmatprep.subr.bf16.mxu1 %v2020_v44 }
 0x169   :  { %1091 = vmatpush1.bf16.msra.mxu0 %v2015_v45  ;;  %1173 = vmatpush1.bf16.msra.mxu1 %v2018_v46 }
 0x16a   :  { %1092 = vmatprep.subr.bf16.mxu0 %v2023_v48  ;;  %1174 = vmatprep.subr.bf16.mxu1 %v2026_v49 }
 0x16d   :  { %1093 = vmatpush1.bf16.msra.mxu0 %v2021_v50  ;;  %1175 = vmatpush1.bf16.msra.mxu1 %v2024_v51  ;;  %v2187_v50 = vmov 0.0   ;;  %v1537_v51 = vand.u32 127, %v91_v18 }
 0x16e   :  { %1762 = vmatprep.subr.bf16.mxu0 %v2027_v21  ;;  %1784 = vmatprep.subr.bf16.mxu1 %v2028_v53  ;;  %84 = vst.msk [vmem:[#allocation2] sm:$0x1] %vm83_vm3, %v2187_v50  ;;  %v1729_v53 = vld [vmem:[%s2341_s6] ss:$0 sm:$0xff]  ;;  %s2188_s6 = smov [#allocation11]  }
 0x16f   :  { %vm1543_vm4 = vcmp.eq.s32.totalorder %v1537_v51, 12  ;;  %s1584_s30 = sshll.u32 %s2188_s6, 4  ;;  %s1585_s30 = int_to_ptr.vmem [resolvable:$true] %s1584_s30 }
 0x170   :  { %1095 = vmatmul.mubr.bf16.vlgmr.msra.gmra.mrb[4].mxu0 %v229_v56  ;;  %1177 = vmatmul.mubr.bf16.vlgmr.msra.gmra.mrb[4].mxu1 %v229_v56  ;;  %vm1545_vm6 = vmand %vm1543_vm4, %vm1544_vm5  ;;  %s2147_s8 = scalar_lea.vmem %s1585_s30, 128  ;;  %p2152_p5 = scmp.lt.s32.totalorder %s1585_s30, %s1585_s30 }
 0x171   :  { %1763 = vmatpush3.bf16.msra.mxu0 %v2029_v54  ;;  %1785 = vmatpush3.bf16.msra.mxu1 %v2030_v55  ;;  %p2148_p4 = scmp.ne.s32.totalorder %s1585_s30, %s2147_s8  ;;  %p2153_p6 = scmp.lt.s32.totalorder %s2147_s8, %s2147_s8 }
 0x172   :  { %1764 = vmatprep.subr.bf16.mxu0 %v2031_v28  ;;  %1786 = vmatprep.subr.bf16.mxu1 %v2032_v57 }
 0x173   :  { %p2154_p7 = por %p2153_p6, %p2152_p5 }
 0x175   :  { %1765 = vmatpush3.bf16.msra.mxu0 %v2033_v58  ;;  %1787 = vmatpush3.bf16.msra.mxu1 %v2034_v59  ;;  %p2155_p8 = pnand %p2154_p7, %p2148_p4 }
 0x176   :  { %1766 = vmatprep.subr.bf16.mxu0 %v2035_v60  ;;  %1788 = vmatprep.subr.bf16.mxu1 %v2036_v61 }
 0x179   :  { %1767 = vmatpush3.bf16.msra.mxu0 %v2037_v62  ;;  %1789 = vmatpush3.bf16.msra.mxu1 %v2038_v63 }
 0x17a   :  { %1768 = vmatprep.subr.bf16.mxu0 %v2039_v0  ;;  %1790 = vmatprep.subr.bf16.mxu1 %v2040_v1 }
 0x17d   :  { %1769 = vmatpush3.bf16.msra.mxu0 %v2041_v2  ;;  %1791 = vmatpush3.bf16.msra.mxu1 %v2042_v3 }
 0x17e   :  { %1770 = vmatprep.subr.bf16.mxu0 %v2043_v4  ;;  %1792 = vmatprep.subr.bf16.mxu1 %v2044_v5  ;;  %v1555_v5 = vld [vmem:[#allocation2] sm:$0x1] }
 0x181   :  { %1771 = vmatpush3.bf16.msra.mxu0 %v2045_v6  ;;  %1793 = vmatpush3.bf16.msra.mxu1 %v2046_v7 }
 0x182   :  { %1772 = vmatprep.subr.bf16.mxu0 %v2047_v8  ;;  %1794 = vmatprep.subr.bf16.mxu1 %v2048_v9 }
 0x185   :  { %1773 = vmatpush3.bf16.msra.mxu0 %v2049_v10  ;;  %1795 = vmatpush3.bf16.msra.mxu1 %v2050_v11 }
 0x186   :  { %1774 = vmatprep.subr.bf16.mxu0 %v2051_v12  ;;  %1796 = vmatprep.subr.bf16.mxu1 %v2052_v13 }
 0x189   :  { %1775 = vmatpush3.bf16.msra.mxu0 %v2053_v14  ;;  %1797 = vmatpush3.bf16.msra.mxu1 %v2054_v15 }
 0x18a   :  { %1776 = vmatprep.subr.bf16.mxu0 %v2055_v16  ;;  %1798 = vmatprep.subr.bf16.mxu1 %v2056_v17 }
 0x18d   :  { %1777 = vmatpush3.bf16.msra.mxu0 %v2057_v24  ;;  %1799 = vmatpush3.bf16.msra.mxu1 %v2058_v25 }
 0x243   :  { %v1096_v32 = vpop.f32.mrb[4].mxu0  ;;  %v1178_v33 = vpop.f32.mrb[4].mxu1 }
 0x244   :  { %v1806_v34 = vadd.f32 %v1096_v32, %v364_v27  ;;  %v1808_v35 = vadd.f32 %v1178_v33, %v372_v29  ;;  %v1098_v36 = vpop.f32.mrb[5].mxu0  ;;  %v1180_v38 = vpop.f32.mrb[5].mxu1 }
 0x245   :  { %v1807_v39 = vadd.f32 %v1098_v36, %v368_v30  ;;  %v1809_v40 = vadd.f32 %v1180_v38, %v376_v31  ;;  %v1100_v41 = vpop.f32.mrb[6].mxu0  ;;  %v1182_v42 = vpop.f32.mrb[6].mxu1 }
 0x246   :  { %v1185_v43 = vmax.f32 %v1806_v34, 0.0  ;;  %v1187_v44 = vmax.f32 %v1808_v35, 0.0  ;;  %v1101_v45 = vpop.f32.mrb[7].mxu0  ;;  %v1183_v37 = vpop.f32.mrb[7].mxu1 }
 0x247   :  { %v1186_v46 = vmax.f32 %v1807_v39, 0.0  ;;  %v1188_v47 = vmax.f32 %v1809_v40, 0.0 }
 0x248   :  { %v1189_v49 = vpack.c.bf16 %v1185_v43, %v1185_v43  ;;  %v1191_v23 = vpack.c.bf16 %v1187_v44, %v1187_v44 }
 0x249   :  { %v1190_v22 = vpack.c.bf16 %v1186_v46, %v1186_v46  ;;  %v1192_v48 = vpack.c.bf16 %v1188_v47, %v1188_v47 }
 0x24b   :  { %1488 = vmatprep.mubr.bf16.mxu0 %v1190_v22  ;;  %1528 = vmatprep.mubr.bf16.mxu1 %v1192_v48 }
 0x24c   :  { %1489 = vmatmul.mubr.bf16.vlgmr.msra.gmra.mrb[8].mxu0 %v1189_v49  ;;  %1529 = vmatmul.mubr.bf16.vlgmr.msra.gmra.mrb[8].mxu1 %v1191_v23 }
 0x31f   :  { %v1778_v52 = vpop.f32.mrb[8].mxu0  ;;  %v1800_v21 = vpop.f32.mrb[8].mxu1 }
 0x320   :  { %v1779_v54 = vpop.f32.mrb[9].mxu0  ;;  %v1801_v55 = vpop.f32.mrb[9].mxu1 }
 0x321   :  { %v1780_v56 = vadd.f32 %v1779_v54, %v1778_v52  ;;  %v1802_v28 = vadd.f32 %v1801_v55, %v1800_v21  ;;  %v1781_v57 = vpop.f32.mrb[10].mxu0  ;;  %v1803_v58 = vpop.f32.mrb[10].mxu1 }
 0x322   :  { %v1782_v59 = vpop.f32.mrb[11].mxu0  ;;  %v1804_v60 = vpop.f32.mrb[11].mxu1 }
 0x323   :  { %v1491_v61 = vadd.f32 %v1780_v56, %v1729_v53 }
 0x325   :  { %v1531_v18 = vadd.f32 %v1802_v28, %v1491_v61 }
 0x327   :  { %v1546_v62 = vsel %vm1545_vm6, %v1531_v18, 0.0 }
 0x328   :  { %1547 = vadd.xlane.f32.xlu0 %v1546_v62 }
 0x3b5   :  { %v1548_v63 = vpop.xlane.xlu0 %1547 }
 0x3b6   :  { %v1549_v0 = vrot.slane %v1548_v63, 4 }
 0x3b8   :  { %v1550_v1 = vadd.f32 %v1549_v0, %v1548_v63 }
 0x3ba   :  { %v1551_v2 = vrot.slane %v1550_v1, 2 }
 0x3bc   :  { %v1552_v3 = vadd.f32 %v1551_v2, %v1550_v1 }
 0x3be   :  { %v1553_v4 = vrot.slane %v1552_v3, 1 }
 0x3c0   :  { %v1554_v6 = vadd.f32 %v1553_v4, %v1552_v3 }
 0x3c2   :  { %v1556_v7 = vadd.f32 %v1555_v5, %v1554_v6 }
 0x3c4   :  { %1558 = vst.msk [vmem:[#allocation2] sm:$0x1] %vm83_vm3, %v1556_v7 }
 0x3cb   :  { %v1564_v8 = vld [vmem:[#allocation2] sm:$0x1] }
 0x3cc   :  { %v1565_v19 = vmul.f32 0.041666668, %v1564_v8 }
 0x3ce   :  { %v1571_v9 = vrot.slane %v1565_v19, %v2281_v20 }
 0x3d0   :  { %1573 = vperm.xlu0 %1830, %v1571_v9  }
 0x44f   :  { %v1574_v10 = vpop.permute.xlu0 %1573 }
 0x450   :  { %v1576_v11 = vsub.f32 %v1531_v18, %v1574_v10 }
 0x452   :  { %1577 = vst [vmem:[#allocation11] sm:$0xff] %v1576_v11 }
 0x453   :  { %2158 = shalt.err (!%p2155_p8)
}
 0x454   :  { %s2159_s11 = scalar_lea.hbm %s2342_s7, 128 }
 0x455   :  { %p2160_p9 = scmp.ne.s32.totalorder %s2342_s7, %s2159_s11  ;;  %p2163_p10 = scmp.lt.u32.totalorder %s2159_s11, %s2342_s7 }
 0x457   :  { %p2165_p11 = pnand %p2163_p10, %p2160_p9 }
 0x459   :  { %2168 = shalt.err (!%p2165_p11)
}
 0x45a   :  { %1587 = dma.vmem_to_hbm [thread:$0]  %s1585_s30, 128, %s2342_s7, [#allocation5]  }
 0x45b   :  { %2175 = dma.done.wait [#allocation5], 128  }
 0x45c   :  { %2176 = vsyncadd [#allocation5], 4294967168 }
 0x45d   :  { %1591 = vsyncpa [#allocation4], 1 }
 0x45e   :  { %1592 = vsyncpa [#allocation7], 1 }
 0x45f   :  { %1593 = vsyncpa [#allocation10], 1 }
 0x460   :  { %1594 = vsyncpa [#allocation5], 1 }

</bundles_post_ra>
